<compile_context>
chip_gen: v5e
topology: v5e:2x2
jax: 0.10.0
libtpu: 0.0.40
codegen_flags: <defaults>
</compile_context>

<pallas_src>
import math

import jax
import jax.numpy as jnp
from jax.experimental import pallas as pl
from jax.experimental.pallas import tpu as pltpu


def _sinusoidal_emb_kernel(t_ref, freqs_ref, shift_ref, out_ref):
    # t_ref     : (TB, 1)   f32  -- timestep column for this tile
    # freqs_ref : (1, dim)  f32  -- constant [freqs | freqs] row (same block every step)
    # shift_ref : (1, dim)  f32  -- constant [0 | pi/2] row
    # out_ref   : (TB, dim) f32  -- [:, :half] = sin(t*f), [:, half:] = sin(t*f + pi/2) = cos(t*f)
    out_ref[...] = jnp.sin(t_ref[...] * freqs_ref[...] + shift_ref[...]).astype(out_ref.dtype)


def _pick_block_b(B, dim):
    # ~4 MiB output tile -> ~8 MiB double-buffered: comfortably under the raised
    # scoped-VMEM limit on all generations (incl. v7x's 64 MiB physical VMEM),
    # and big enough to amortize the ~0.35 us/step pipeline overhead.
    budget_bytes = 4 * 1024 * 1024
    rows = max(8, min(budget_bytes // (dim * 4), 4096))
    if B <= rows:
        return B  # single tile (full-extent block is always legal)
    # Prefer a sublane-aligned tile that divides B exactly: no padded last tile,
    # no wasted EUP work, no masked final store.
    cand = (rows // 8) * 8
    for tb in range(cand, 7, -8):
        if B % tb == 0:
            return tb
    return cand


def sinusoidal_position_embeddings(t, dim, *, block_b=None, force_pallas=False):
    """t: (B,) timesteps (any numeric dtype). Returns (B, dim) float32 with
    [:, :dim//2] = sin, [:, dim//2:] = cos (matches torch.cat([sin, cos], dim=1))."""
    if dim % 2 != 0:
        raise ValueError("dim must be even (the torch module implicitly assumes this)")
    if dim < 4:
        raise ValueError("dim must be >= 4 so that dim//2 - 1 > 0")
    half = dim // 2
    B = t.shape[0]

    # Frequency row, computed once in XLA and hoisted out of the kernel/grid loop.
    scale = -math.log(10000.0) / (half - 1)
    freqs = jnp.exp(jnp.arange(half, dtype=jnp.float32) * scale)

    # Tiny shapes: the Pallas call is launch/step-overhead bound; plain XLA wins.
    if not force_pallas and B * dim * 4 < (1 << 20):
        emb = t.astype(jnp.float32)[:, None] * freqs[None, :]
        return jnp.concatenate([jnp.sin(emb), jnp.cos(emb)], axis=1)

    # Timesteps as an f32 column. (Cast is exact for |t| < 2^24 -- fine for DDPM.)
    t_col = t.astype(jnp.float32).reshape(B, 1)

    # Fused-sin constants: out[:, j] = sin(t * freqs_full[j] + shift[j]).
    freqs_full = jnp.concatenate([freqs, freqs]).reshape(1, dim)
    shift = jnp.concatenate(
        [jnp.zeros((half,), jnp.float32),
         jnp.full((half,), 0.5 * math.pi, jnp.float32)]).reshape(1, dim)

    tb = block_b if block_b is not None else _pick_block_b(B, dim)
    tb = min(tb, B)
    grid = (pl.cdiv(B, tb),)

    cost = pl.CostEstimate(
        flops=2 * B * dim,                       # one mul + one add per output element
        transcendentals=B * dim,                 # one sin per output element
        bytes_accessed=B * dim * 4 + B * 4 + 2 * dim * 4,
    )

    return pl.pallas_call(
        _sinusoidal_emb_kernel,
        out_shape=jax.ShapeDtypeStruct((B, dim), jnp.float32),
        grid=grid,
        in_specs=[
            pl.BlockSpec((tb, 1), lambda i: (i, 0)),      # timestep column tile
            pl.BlockSpec((1, dim), lambda i: (0, 0)),     # constant [freqs | freqs] row
            pl.BlockSpec((1, dim), lambda i: (0, 0)),     # constant [0 | pi/2] row
        ],
        out_specs=pl.BlockSpec((tb, dim), lambda i: (i, 0)),
        compiler_params=pltpu.CompilerParams(
            dimension_semantics=("parallel",),            # rows independent -> megacore
            vmem_limit_bytes=32 * 1024 * 1024,            # headroom for the 4 MiB tiles
        ),
        cost_estimate=cost,
    )(t_col, freqs_full, shift)


def _reference(t, dim):
    half = dim // 2
    emb = math.log(10000.0) / (half - 1)
    emb = jnp.exp(jnp.arange(half, dtype=jnp.float32) * -emb)
    emb = t.astype(jnp.float32)[:, None] * emb[None, :]
    return jnp.concatenate([jnp.sin(emb), jnp.cos(emb)], axis=1)


if __name__ == "__main__":
    key = jax.random.PRNGKey(0)
    B, dim = 32, 64
    # deterministic "diffusion timesteps" in [0, 1000)
    t = jax.random.randint(key, (B,), minval=0, maxval=1000).astype(jnp.int32)

    # block_b=8 -> 4 grid steps, exercising the tiled / pipelined Pallas path
    # even at this small demo size (force_pallas bypasses the tiny-shape XLA
    # fallback so the kernel itself is what runs).
    out = sinusoidal_position_embeddings(t, dim, block_b=8, force_pallas=True)
    out = jax.block_until_ready(out)

    ref = _reference(t, dim)
    assert out.shape == (B, dim)
    assert out.dtype == jnp.float32
    # The phase t*freq is bit-identical to the reference; remaining differences
    # are Mosaic-vs-XLA sin range reduction (~1e-4 for |phase| up to ~1e3) plus
    # ~|phase|*2^-24 (~6e-5) from the +pi/2 fused-cos rewrite.  5e-3 keeps a
    # wide margin while still catching any layout/ordering bug.
    err = float(jnp.max(jnp.abs(out - ref)))
    assert err < 5e-3, f"max abs err {err}"
    print("KERNEL_OK")
</pallas_src>

<mosaic_0001>
module attributes {stable_mosaic.version = 11 : i64} {
  func.func @_sinusoidal_emb_kernel(%arg0: i32, %arg1: memref<8x1xf32, #tpu.memory_space<vmem>>, %arg2: memref<1x64xf32, #tpu.memory_space<vmem>>, %arg3: memref<1x64xf32, #tpu.memory_space<vmem>>, %arg4: memref<8x64xf32, #tpu.memory_space<vmem>>) attributes {dimension_semantics = [#tpu.dimension_semantics<parallel>], iteration_bounds = array<i64: 4>, scalar_prefetch = 0 : i64, scratch_operands = 0 : i64, tpu.core_type = #tpu.core_type<tc>, window_params = [{transform_indices = @transform_0, window_bounds = array<i64: 8, 1>}, {pipeline_mode = #tpu.pipeline_mode<synchronous>, transform_indices = @transform_1, window_bounds = array<i64: 1, 64>}, {pipeline_mode = #tpu.pipeline_mode<synchronous>, transform_indices = @transform_2, window_bounds = array<i64: 1, 64>}, {transform_indices = @transform_3, window_bounds = array<i64: 8, 64>}]} {
    %c0 = arith.constant 0 : index
    %c0_0 = arith.constant 0 : index
    %0 = vector.load %arg1[%c0, %c0_0] : memref<8x1xf32, #tpu.memory_space<vmem>>, vector<8x1xf32>
    %c0_1 = arith.constant 0 : index
    %c0_2 = arith.constant 0 : index
    %1 = vector.load %arg2[%c0_1, %c0_2] : memref<1x64xf32, #tpu.memory_space<vmem>>, vector<1x64xf32>
    %2 = vector.broadcast %0 : vector<8x1xf32> to vector<8x64xf32>
    %3 = vector.broadcast %1 : vector<1x64xf32> to vector<8x64xf32>
    %4 = arith.mulf %2, %3 : vector<8x64xf32>
    %c0_3 = arith.constant 0 : index
    %c0_4 = arith.constant 0 : index
    %5 = vector.load %arg3[%c0_3, %c0_4] : memref<1x64xf32, #tpu.memory_space<vmem>>, vector<1x64xf32>
    %6 = vector.broadcast %5 : vector<1x64xf32> to vector<8x64xf32>
    %7 = arith.addf %4, %6 : vector<8x64xf32>
    %8 = math.sin %7 : vector<8x64xf32>
    %c0_5 = arith.constant 0 : index
    %c0_6 = arith.constant 0 : index
    %9 = vector.load %arg4[%c0_5, %c0_6] : memref<8x64xf32, #tpu.memory_space<vmem>>, vector<8x64xf32>
    tpu.vector_store %arg4[%c0_5, %c0_6], %8 {strides = array<i32>} : memref<8x64xf32, #tpu.memory_space<vmem>>, vector<8x64xf32>,
    return
  }
  func.func @transform_0(%arg0: i32) -> (i32, i32) {
    %c0_i32 = arith.constant 0 : i32
    %c0_i32_0 = arith.constant 0 : i32
    return %arg0, %c0_i32 : i32, i32
  }
  func.func @transform_1(%arg0: i32) -> (i32, i32) {
    %c0_i32 = arith.constant 0 : i32
    %c0_i32_0 = arith.constant 0 : i32
    %c0_i32_1 = arith.constant 0 : i32
    return %c0_i32, %c0_i32_0 : i32, i32
  }
  func.func @transform_2(%arg0: i32) -> (i32, i32) {
    %c0_i32 = arith.constant 0 : i32
    %c0_i32_0 = arith.constant 0 : i32
    %c0_i32_1 = arith.constant 0 : i32
    return %c0_i32, %c0_i32_0 : i32, i32
  }
  func.func @transform_3(%arg0: i32) -> (i32, i32) {
    %c0_i32 = arith.constant 0 : i32
    %c0_i32_0 = arith.constant 0 : i32
    return %arg0, %c0_i32 : i32, i32
  }
}

</mosaic_0001>

<bundles_post_ra>
// kernel: tpu_custom_call.1
= control target key start
LH: loop header
LB: loop body
LE: loop exit
PB: predicated region body
PF: predicated region fallthrough
CT: control target
= control target key end

     0   :  { %8 = vsyncpa [#allocation3], 0  ;;  %s734_s0 = inlined_call_operand.vmem [shape: f32[32,1], index: 0, kind: input, shape index: {}]   ;;  %s735_s1 = inlined_call_operand.vmem [shape: f32[1,64], index: 1, kind: input, shape index: {}]   ;;  %s736_s2 = inlined_call_operand.vmem [shape: f32[1,64], index: 2, kind: input, shape index: {}]   ;;  %s737_s3 = inlined_call_operand.hbm [shape: f32[32,64], index: 3, kind: output, shape index: {}]  }
   0x1   :  { %10 = vsyncpa [#allocation3 + $0x1], 0  ;;  %s567_s12 = smov 0   ;;  %s569_s13 = smov 0  }
   0x2   :  { %s571_s14 = smov 0   ;;  %s573_s15 = smov 0  }
   0x3 LB: > { %s588_s16 = sadd.s32 4294967295, %s538_s15   ;;  %s414_s17 = sadd.s32 4294967294, %s538_s15   ;;  %s538_s15 = sphi %s573_s15, %s745_s15   ;;  %s534_s14 = sphi %s571_s14, %s744_s14   ;;  %s530_s13 = sphi %s569_s13, %s743_s13   ;;  %s526_s12 = sphi %s567_s12, %s742_s12  }
   0x4   : > { %s592_s18 = sadd.s32 1, %s538_s15   ;;  %s91_s19 = sadd.s32 1, %s534_s14 }
   0x5   : > { %s88_s20 = ssub.s32 %s538_s15, %s592_s18  ;;  %p101_p0 = scmp.ne.s32.totalorder %s534_s14, %s530_s13 }
   0x6   : > { %p89_p1 = scmp.eq.s32.totalorder %s88_s20, 0  ;;  %p102_p2 = scmp.eq.s32.totalorder %s588_s16, 3 }
   0x7   : > { %p107_p3 = scmp.ne.s32.totalorder %s530_s13, %s526_s12  ;;  %p108_p4 = scmp.eq.s32.totalorder %s414_s17, 3 }
   0x8   : > { %s603_s21 = scalar_select %p89_p1, %s534_s14, %s91_s19  }
   0x9   : > { %p605_p5 = por %p102_p2, %p101_p0  ;;  %p609_p6 = por %p108_p4, %p107_p3 }
   0xa   : > { %p417_p7 = scmp.ge.s32.totalorder %s538_s15, 1  ;;  %p139_p8 = scmp.lt.s32.totalorder %s538_s15, 5 }
   0xc   : > { %p140_p9 = pnand %p417_p7, %p139_p8 }
   0xd   : > { %p162_p10 = scmp.lt.s32.totalorder (!%p140_p9), %s588_s16, 3  ;;  %s159_s6 = sand.u32 (!%p140_p9), 1, %s530_s13  }
   0xe   : > { %143 = sbr.rel (%p140_p9) target bundleno = 242 (0xf2), region = 32  ;;  %s418_s7 = sshll.u32 (!%p140_p9), %s159_s6, 3 }
   0xf   : > { %s424_s8 = sshll.u32 (!%p140_p9), %s588_s16, 3  ;;  %s161_s17 = scalar_lea.vmem (!%p140_p9), [#allocation2], %s418_s7 }
  0x10   : > { %s350_s11 = scalar_lea.hbm (!%p140_p9), %s737_s3, %s424_s8  ;;  %s701_s19 = sshll.u32 (!%p140_p9), %s161_s17, 4  ;;  %s353_s19 = int_to_ptr.vmem [resolvable:$true] %s701_s19 }
  0x11   : > { %s354_s20 = sshll.u32 (!%p140_p9), %s350_s11, 4  ;;  %s355_s20 = int_to_ptr.hbm [resolvable:$true] %s354_s20 }
  0x13   : > { %v540_v0 = vmov 0   ;;  %s163_s24 = scalar_select %p162_p10, %s588_s16, 3  ;;  %v474_v2 = vld [vmem:[%s735_s1] ss:$0 sm:$0xff]  ;;  %v541_v18 = vmov 683565275  }
  0x14   : > { %473 = vset.pattern.permute.xlu0 %v540_v0  ;;  %v475_v3 = vld [vmem:[%s736_s2] ss:$0 sm:$0xff]  ;;  %v542_v20 = vmov 2475754826   ;;  %v543_v23 = vmov 2131351028  }
  0x15   : > { %s419_s25 = sshll.u32 %s163_s24, 3  ;;  %v544_v26 = vmov 2102212464   ;;  %v545_v29 = vmov 920167782   ;;  %s340_s16 = scalar_lea.sflag [#allocation3], %s159_s6 }
  0x16   : > { %s165_s28 = scalar_lea.vmem %s734_s0, %s419_s25  ;;  %v546_v32 = vmov 1326507024   ;;  %s490_s24 = sshra.s32 %s355_s20, 4  ;;  %s491_s24 = int_to_ptr.hbm [resolvable:$true] %s490_s24 }
  0x17   : > { %v166_v1 = vld [vmem:[%s165_s28] sm:$0xff]  ;;  %s492_s25 = scalar_lea.hbm %s491_s24, 8  ;;  %s496_s28 = scalar_lea.hbm %s737_s3, 32 }
  0x18   : > { %170 = vperm.xlu0 %473, %v166_v1   ;;  %p493_p11 = scmp.ne.s32.totalorder %s491_s24, %s492_s25  ;;  %p497_p0 = scmp.lt.s32.totalorder %s491_s24, %s737_s3 }
  0x19   : > { %p498_p1 = scmp.lt.s32.totalorder %s496_s28, %s492_s25 }
  0x1a   : > { %p494_p12 = pnand %p493_p11, %p605_p5 }
  0x1b   : > { %p499_p2 = por %p498_p1, %p497_p0 }
  0x1c   : > { %p495_p13 = pneg %p494_p12 }
  0x1e   : > { %p500_p3 = pnand %p499_p2, %p495_p13 }
  0x8a   : > { %v171_v4 = vpop.permute.xlu0 %170 }
  0x8b   : > { %v176_v5 = vmul.f32 %v474_v2, %v171_v4 }
  0x8d   : > { %v627_v6 = vadd.f32 %v475_v3, %v176_v5 }
  0x8f   : > { %v185_v7 = vand.u32 2139095040, %v627_v6  ;;  %v182_v10 = vand.u32 2147483647, %v627_v6  ;;  %vm184_vm12 = vcmp.lt.s32.totalorder %v627_v6, 0 }
  0x91   : > { %v186_v8 = vshrl.u32 %v185_v7, 23  ;;  %v189_v12 = vand.u32 8388607, %v182_v10  ;;  %vm685_vm13 = vcmp.le.f32.partialorder %v182_v10, 0.7853982 }
  0x93   : > { %v420_v9 = vadd.s32 4294967169, %v186_v8  ;;  %v190_v16 = vor.u32 8388608, %v189_v12 }
  0x95   : > { %v192_v11 = vadd.s32 1, %v420_v9  ;;  %v644_v39 = vshll.u32 %v190_v16, 8 }
  0x97   : > { %vm193_vm0 = vcmp.gt.s32.totalorder %v192_v11, 0  ;;  %v231_v48 = vand.u32 65535, %v644_v39  ;;  %v232_v49 = vshrl.u32 %v644_v39, 16 }
  0x98   : > { %v194_v13 = vsel %vm193_vm0, %v192_v11, 0 }
  0x99   : > { %v196_v14 = vand.u32 31, %v194_v13  ;;  %v635_v17 = vshrl.u32 %v194_v13, 5 }
  0x9b   : > { %v633_v15 = vsub.s32 32, %v196_v14  ;;  %v199_v19 = vshll.u32 %v541_v18, %v196_v14  ;;  %v202_v21 = vshll.u32 %v542_v20, %v196_v14  ;;  %v205_v25 = vshll.u32 %v543_v23, %v196_v14 }
  0x9c   : > { %v208_v28 = vshll.u32 %v544_v26, %v196_v14  ;;  %v211_v31 = vshll.u32 %v545_v29, %v196_v14  ;;  %vm214_vm1 = vcmp.lt.s32.totalorder %v635_v17, 1  ;;  %vm217_vm2 = vcmp.lt.s32.totalorder %v635_v17, 4 }
  0x9d   : > { %v200_v22 = vshrl.u32 %v542_v20, %v633_v15  ;;  %v203_v24 = vshrl.u32 %v543_v23, %v633_v15  ;;  %v206_v27 = vshrl.u32 %v544_v26, %v633_v15  ;;  %v209_v30 = vshrl.u32 %v545_v29, %v633_v15 }
  0x9e   : > { %v212_v33 = vshrl.u32 %v546_v32, %v633_v15  ;;  %vm216_vm3 = vcmp.lt.s32.totalorder %v635_v17, 3  ;;  %vm215_vm4 = vcmp.lt.s32.totalorder %v635_v17, 2  ;;  %v198_v13 = vshrl.u32 %v541_v18, %v633_v15 }
  0x9f   : > { %v201_v34 = vor.u32 %v200_v22, %v199_v19  ;;  %v204_v35 = vor.u32 %v203_v24, %v202_v21  ;;  %v207_v36 = vor.u32 %v206_v27, %v205_v25  ;;  %v210_v37 = vor.u32 %v209_v30, %v208_v28 }
  0xa0   : > { %v213_v38 = vor.u32 %v212_v33, %v211_v31 }
  0xa1   : > { %v222_v40 = vsel %vm214_vm1, %v201_v34, %v204_v35  ;;  %v226_v41 = vsel %vm214_vm1, %v204_v35, %v207_v36  ;;  %v223_v42 = vsel %vm217_vm2, %v210_v37, 920167782  ;;  %v219_v9 = vsel %vm217_vm2, %v207_v36, 2102212464 }
  0xa2   : > { %v227_v43 = vsel %vm217_vm2, %v213_v38, 1326507024  ;;  %v224_v44 = vsel %vm216_vm3, %v207_v36, %v223_v42  ;;  %v218_v22 = vsel %vm214_vm1, %v198_v13, %v201_v34  ;;  %v220_v23 = vsel %vm216_vm3, %v204_v35, %v219_v9 }
  0xa3   : > { %v228_v45 = vsel %vm216_vm3, %v210_v37, %v227_v43  ;;  %v225_v46 = vsel %vm215_vm4, %v222_v40, %v224_v44  ;;  %v221_v15 = vsel %vm215_vm4, %v218_v22, %v220_v23  ;;  %vm337_vm1 = vcmask 523264  }
  0xa4   : > { %v229_v47 = vsel %vm215_vm4, %v226_v41, %v228_v45  ;;  %v255_v52 = vand.u32 65535, %v225_v46  ;;  %v256_v53 = vshrl.u32 %v225_v46, 16  ;;  %v275_v30 = vmul.u32 %v644_v39, %v221_v15 }
  0xa5   : > { %v233_v50 = vand.u32 65535, %v229_v47  ;;  %v234_v51 = vshrl.u32 %v229_v47, 16  ;;  %vm325_vm2 = vweird.f32 %v627_v6 }
  0xa6   : > { %v258_v56 = vmul.u32 %v256_v53, %v231_v48  ;;  %v259_v57 = vmul.u32 %v255_v52, %v232_v49  ;;  %v257_v61 = vmul.u32 %v255_v52, %v231_v48  ;;  %v260_v2 = vmul.u32 %v256_v53, %v232_v49 }
  0xa7   : > { %v236_v54 = vmul.u32 %v234_v51, %v231_v48  ;;  %v237_v55 = vmul.u32 %v233_v50, %v232_v49  ;;  %v235_v58 = vmul.u32 %v233_v50, %v231_v48  ;;  %v238_v60 = vmul.u32 %v234_v51, %v232_v49 }
  0xa8   : > { %v261_v62 = vshll.u32 %v258_v56, 16  ;;  %v263_v4 = vshll.u32 %v259_v57, 16  ;;  %v262_v20 = vshrl.u32 %v258_v56, 16  ;;  %v264_v26 = vshrl.u32 %v259_v57, 16 }
  0xa9   : > { %v239_v59 = vshll.u32 %v236_v54, 16  ;;  %v241_v63 = vshll.u32 %v237_v55, 16  ;;  %v240_v14 = vshrl.u32 %v236_v54, 16  ;;  %v242_v24 = vshrl.u32 %v237_v55, 16 }
  0xaa   : > { %vm265_vm6 = vc.u32 %v257_v61, %v261_v62  ;;  %v267_v5 = vadd.s32 %v261_v62, %v257_v61 }
  0xab   : > { %vm243_vm5 = vc.u32 %v235_v58, %v239_v59  ;;  %v245_v1 = vadd.s32 %v239_v59, %v235_v58  ;;  %v266_v8 = vsel %vm265_vm6, 1, %v540_v0 }
  0xac   : > { %v244_v3 = vsel %vm243_vm5, 1, %v540_v0  ;;  %v268_v12 = vadd.s32 %v266_v8, %v260_v2  ;;  %vm269_vm8 = vc.u32 %v267_v5, %v263_v4  ;;  %v271_v29 = vadd.s32 %v267_v5, %v263_v4 }
  0xad   : > { %v246_v7 = vadd.s32 %v244_v3, %v238_v60  ;;  %vm247_vm7 = vc.u32 %v245_v1, %v241_v63  ;;  %v270_v19 = vsel %vm269_vm8, 1, %v540_v0 }
  0xae   : > { %v248_v11 = vsel %vm247_vm7, 1, %v540_v0  ;;  %v272_v21 = vadd.s32 %v270_v19, %v268_v12 }
  0xaf   : > { %v250_v16 = vadd.s32 %v248_v11, %v246_v7 }
  0xb0   : > { %v273_v27 = vadd.s32 %v272_v21, %v262_v20 }
  0xb1   : > { %v251_v25 = vadd.s32 %v250_v16, %v240_v14 }
  0xb2   : > { %v274_v18 = vadd.s32 %v273_v27, %v264_v26 }
  0xb3   : > { %v252_v28 = vadd.s32 %v251_v25, %v242_v24 }
  0xb4   : > { %v278_v0 = vadd.s32 1, %v274_v18 }
  0xb5   : > { %vm277_vm9 = vc.u32 %v252_v28, %v271_v29  ;;  %v276_v17 = vadd.s32 %v271_v29, %v252_v28 }
  0xb6   : > { %v279_v31 = vsel %vm277_vm9, %v278_v0, %v274_v18 }
  0xb7   : > { %v280_v32 = vadd.s32 %v279_v31, %v275_v30 }
  0xb9   : > { %v281_v33 = vadd.s32 536870912, %v280_v32 }
  0xbb   : > { %v282_v34 = vshrl.u32 %v281_v33, 30 }
  0xbd   : > { %v283_v36 = vshll.u32 %v282_v34, 30  ;;  %v306_v56 = vsub.s32 4, %v282_v34 }
  0xbf   : > { %v284_v35 = vsub.s32 %v280_v32, %v283_v36  ;;  %v307_v61 = vsel %vm184_vm12, %v306_v56, %v282_v34 }
  0xc0   : > { %v309_v10 = vsel %vm685_vm13, 0, %v307_v61 }
  0xc1   : > { %vm285_vm10 = vcmp.lt.s32.totalorder %v284_v35, 0  ;;  %v286_v37 = vsub.s32 0, %v284_v35  ;;  %v326_v5 = vadd.s32 3, %v309_v10 }
  0xc3   : > { %v287_v38 = vsel %vm285_vm10, %v286_v37, %v284_v35  ;;  %v327_v12 = vand.u32 3, %v326_v5 }
  0xc4   : > { %v288_v40 = vclz %v287_v38 }
  0xc5   : > { %vm329_vm14 = vcmp.eq.s32.totalorder %v327_v12, 0  ;;  %vm332_vm15 = vcmp.eq.s32.totalorder %v327_v12, 2  ;;  %vm328_vm0 = vcmp.lt.s32.totalorder %v327_v12, 2 }
  0xc6   : > { %v421_v41 = vadd.s32 4294967294, %v288_v40 }
  0xc8   : > { %vm422_vm11 = vcmp.lt.s32.totalorder %v421_v41, 0 }
  0xc9   : > { %v291_v42 = vsel %vm422_vm11, 0, %v421_v41 }
  0xca   : > { %v292_v43 = vsub.s32 32, %v291_v42  ;;  %v296_v44 = vsub.s32 4294967266, %v291_v42  ;;  %v293_v45 = vshll.u32 %v284_v35, %v291_v42 }
  0xcc   : > { %v294_v46 = vshrl.u32 %v276_v17, %v292_v43  ;;  %v297_v47 = vadd.s32 127, %v296_v44 }
  0xce   : > { %v295_v39 = vor.u32 %v294_v46, %v293_v45  ;;  %v298_v48 = vshll.u32 %v297_v47, 23 }
  0xd0   : > { %v299_v49 = vor.u32 4788187, %v298_v48  ;;  %v302_v51 = vcvt.s32.f32 %v295_v39 }
  0xd2   : > { %v300_v50 = vand.u32 2147483647, %v299_v49 }
  0xd4   : > { %v303_v52 = vmul.f32 %v302_v51, %v300_v50 }
  0xd6   : > { %v304_v53 = vxor.u32 2147483648, %v303_v52 }
  0xd8   : > { %v305_v55 = vsel %vm184_vm12, %v304_v53, %v303_v52 }
  0xd9   : > { %v308_v57 = vsel %vm685_vm13, %v627_v6, %v305_v55 }
  0xda   : > { %v310_v58 = vmul.f32 %v308_v57, %v308_v57 }
  0xdc   : > { %v311_v59 = vmul.f32 -0.001358992, %v310_v58  ;;  %v318_v60 = vmul.f32 -0.00019511016, %v310_v58 }
  0xde   : > { %v312_v62 = vadd.f32 0.041655596, %v311_v59  ;;  %v319_v63 = vadd.f32 0.008332121, %v318_v60 }
  0xe0   : > { %v313_v1 = vmul.f32 %v312_v62, %v310_v58  ;;  %v320_v2 = vmul.f32 %v319_v63, %v310_v58 }
  0xe2   : > { %v314_v3 = vadd.f32 -0.4999988, %v313_v1  ;;  %v321_v4 = vadd.f32 -0.16666654, %v320_v2 }
  0xe4   : > { %v315_v7 = vmul.f32 %v314_v3, %v310_v58  ;;  %v322_v8 = vmul.f32 %v321_v4, %v310_v58 }
  0xe6   : > { %v316_v9 = vadd.f32 1.0, %v315_v7  ;;  %v323_v11 = vadd.f32 1.0, %v322_v8 }
  0xe8   : > { %v324_v13 = vmul.f32 %v323_v11, %v308_v57  ;;  %v333_v14 = vxor.u32 2147483648, %v316_v9 }
  0xea   : > { %v330_v16 = vxor.u32 2147483648, %v324_v13  ;;  %v334_v20 = vsel %vm332_vm15, %v333_v14, %v324_v13 }
  0xec   : > { %v331_v19 = vsel %vm329_vm14, %v316_v9, %v330_v16 }
  0xed   : > { %v335_v21 = vsel %vm328_vm0, %v331_v19, %v334_v20 }
  0xee   : > { %v336_v22 = vsel %vm325_vm2, nan, %v335_v21 }
  0xef   : > { %338 = vst.msk [vmem:[%s161_s17] sm:$0xff] %vm337_vm1, %v336_v22 }
  0xf0   : > { %503 = shalt.err (!%p500_p3)
}
  0xf1   : > { %427 = dma.vmem_to_hbm [thread:$0]  (%p605_p5), %s353_s19, 128, %s355_s20, %s340_s16  }
  0xf2 PF: > { %p433_p4 = scmp.ge.s32.totalorder %s538_s15, 2  ;;  %s366_s4 = sand.u32 1, %s526_s12  }
  0xf3   : > { %s367_s5 = scalar_lea.sflag [#allocation3], %s366_s4 }
  0xf4   : > { %p430_p7 = pnand %p433_p4, %p609_p6 }
  0xf6   : > { %p431_p8 = pneg %p430_p7 }
  0xf8   : > { %521 = dma.done.wait (%p431_p8), %s367_s5, 128  }
  0xf9   : > { %523 = vsyncadd (%p431_p8), %s367_s5, 4294967168  ;;  %p13_p9 = scmp.ge.s32.totalorder %s592_s18, 6   ;;  %s742_s12 = smov %s530_s13 }
  0xfa   : > { %s743_s13 = smov %s534_s14  ;;  %s744_s14 = smov %s603_s21 }
  0xfb   : > { %s745_s15 = smov %s592_s18  ;;  %15 = sbr.rel (!%p13_p9) target bundleno = 3 (0x3), region = 67 }
 0x100   :  { %373 = vsyncpa [#allocation3], 1 }
 0x101   :  { %375 = vsyncpa [#allocation3 + $0x1], 1 }

</bundles_post_ra>
